<compile_context>
chip_gen: v7x
topology: tpu7x:2x2x1
jax: 0.10.0
libtpu: 0.0.40
codegen_flags: <defaults>
</compile_context>

<pallas_src>
from functools import partial

import numpy as np
import jax
import jax.numpy as jnp
from jax import lax
from jax.experimental import pallas as pl
from jax.experimental.pallas import tpu as pltpu

C_IN = 3
C_OUT = 3
KH = 3  # kernel taps along H (kernel along W is 1)


def _rup(v, m):
    return ((v + m - 1) // m) * m


def _tpu_generation_params():
    """Return (vmem_capacity_bytes, num_tensorcores) with conservative fallbacks."""
    vmem_bytes = 64 << 20   # conservative default: v7x VMEM
    num_tc = 2              # conservative default: assume 2 TCs -> keep >= 2 grid steps
    try:
        info = pltpu.get_tpu_info()
        for attr in ("vmem_capacity_bytes", "vmem_bytes"):
            v = getattr(info, attr, None)
            if v:
                vmem_bytes = int(v)
                break
        cores = None
        for attr in ("num_cores", "tensorcore_count", "core_count"):
            cores = getattr(info, attr, None)
            if cores:
                break
        if cores:
            num_tc = int(cores)
        else:
            # v7x (64 MiB VMEM per TC) has 2 TCs per chip; v5e/v6e (128 MiB) have 1.
            num_tc = 2 if vmem_bytes <= (64 << 20) else 1
    except Exception:
        pass
    return vmem_bytes, num_tc


def _choose_batch_block(N, per_img_bytes, budget_bytes, num_tc):
    """Images per grid step: as large as the double-buffered budget allows.

    The ">= num_tc grid steps" floor is only applied on multi-TensorCore chips.
    A non-divisor Nb (ragged tail block) is used when the best divisor would more
    than double the number of grid steps (e.g. prime N)."""
    cap = max(1, budget_bytes // (2 * per_img_bytes))
    if num_tc >= 2 and N >= 2:
        cap = min(cap, max(1, N // num_tc))
    cap = max(1, min(cap, N))
    best_div = 1
    for d in range(1, cap + 1):
        if N % d == 0:
            best_div = d
    if 2 * best_div >= cap:
        return best_div
    return cap  # ragged tail handled by pl.cdiv grid + Pallas bounds masking


def conv_kernel(w_ref, b_ref, x_ref, o_ref):
    # w_ref: SMEM f32[27]  flattened OIHW weights, index = co*9 + ci*3 + kh
    # b_ref: SMEM f32[3]
    # x_ref: VMEM f32[Nb, 3, H_out, 2W]  row-pair folded: lanes [0:W]=x[2ho], [W:2W]=x[2ho+1]
    # o_ref: VMEM f32[Nb, 3, H_out, W]
    nb_blk, _, h_out, w2 = x_ref.shape
    wc = w2 // 2  # = W

    # Hoist all SMEM scalar reads out of the image / channel loops.
    wgt = [w_ref[i] for i in range(C_OUT * C_IN * KH)]
    bias = [b_ref[c] for c in range(C_OUT)]

    # Top-padding mask for the kh=0 tap: row 0 of every image sees a zero row above it.
    not_first_row = lax.broadcasted_iota(jnp.int32, (h_out, wc), 0) > 0

    def body(nb, carry):
        accs = [None] * C_OUT
        for ci in range(C_IN):
            fc = x_ref[nb, ci]            # (H_out, 2W)
            t1 = fc[:, :wc]               # kh=1 tap: x[2ho]
            t2 = fc[:, wc:]               # kh=2 tap: x[2ho+1]
            # kh=0 tap: x[2ho-1] = previous folded row's odd half (zero at ho==0).
            t0 = jnp.where(not_first_row, pltpu.roll(t2, shift=1, axis=0), 0.0)
            for co in range(C_OUT):
                k = co * (C_IN * KH) + ci * KH
                term = wgt[k] * t0 + wgt[k + 1] * t1 + wgt[k + 2] * t2
                accs[co] = term if accs[co] is None else accs[co] + term
        # Exactly one store per output plane.
        for co in range(C_OUT):
            o_ref[nb, co] = accs[co] + bias[co]
        return carry

    lax.fori_loop(0, nb_blk, body, 0)


@partial(jax.jit, static_argnames=("vmem_budget_bytes",))
def downsample(x, w, b, *, vmem_budget_bytes=None):
    """x: (N, 3, H, W) f32; w: (3, 3, 3, 1) OIHW; b: (3,).  Returns (N, 3, ceil(H/2), W)."""
    N, C, H, W = x.shape
    assert C == C_IN
    if H % 2 != 0:
        # Odd H: PyTorch produces (H+1)//2 rows and reads the bottom zero pad row;
        # append it so the even-H row-pair fold below applies unchanged.
        x = jnp.pad(x, ((0, 0), (0, 0), (0, 1), (0, 0)))
        H = H + 1
    H_out = H // 2

    # Free (row-major) reshape: fold adjacent row pairs into the lane dimension.
    x_f = x.reshape(N, C, H_out, 2 * W)

    w_flat = w[:, :, :, 0].reshape(-1).astype(jnp.float32)   # (27,), (co, ci, kh) order
    b = b.astype(jnp.float32)

    vmem_cap, num_tc = _tpu_generation_params()
    if vmem_budget_bytes is None:
        # Large double-buffered blocks: 16 MiB on v7x (64 MiB VMEM), 32 MiB on v5e/v6e.
        vmem_budget_bytes = min(32 << 20, vmem_cap // 4)

    per_img_bytes = (C_IN * _rup(H_out, 8) * _rup(2 * W, 128)
                     + C_OUT * _rup(H_out, 8) * _rup(W, 128)) * 4
    Nb = _choose_batch_block(N, per_img_bytes, vmem_budget_bytes, num_tc)
    grid = (pl.cdiv(N, Nb),)

    blk_bytes = Nb * per_img_bytes
    vmem_limit = 2 * blk_bytes + (2 << 20)          # double-buffered blocks + slack
    vmem_limit = int(min(max(vmem_limit, 8 << 20), min(48 << 20, (vmem_cap * 3) // 4)))

    grid_spec = pltpu.PrefetchScalarGridSpec(
        num_scalar_prefetch=2,  # w_flat, b land in SMEM
        grid=grid,
        in_specs=[
            pl.BlockSpec((Nb, C_IN, H_out, 2 * W), lambda n, w_s, b_s: (n, 0, 0, 0)),
        ],
        out_specs=pl.BlockSpec((Nb, C_OUT, H_out, W), lambda n, w_s, b_s: (n, 0, 0, 0)),
    )

    return pl.pallas_call(
        conv_kernel,
        out_shape=jax.ShapeDtypeStruct((N, C_OUT, H_out, W), jnp.float32),
        grid_spec=grid_spec,
        compiler_params=pltpu.CompilerParams(
            dimension_semantics=("parallel",),
            vmem_limit_bytes=vmem_limit,
        ),
    )(w_flat, b, x_f)


if __name__ == "__main__":
    key = jax.random.PRNGKey(0)
    k_x, k_w, k_b = jax.random.split(key, 3)

    # Small shapes consistent with the module (channels fixed at 3 by the conv; W=25 as in spec).
    N, C, H, W = 2, 3, 16, 25
    x = jax.random.normal(k_x, (N, C, H, W), dtype=jnp.float32)

    # Deterministic parameter init (PyTorch Conv2d weight shape: (out, in, kH, kW) = (3, 3, 3, 1)).
    fan_in = C_IN * KH * 1
    bound = 1.0 / np.sqrt(fan_in)
    w = jax.random.uniform(k_w, (C_OUT, C_IN, KH, 1), minval=-bound, maxval=bound, dtype=jnp.float32)
    b = jax.random.uniform(k_b, (C_OUT,), minval=-bound, maxval=bound, dtype=jnp.float32)

    out = jax.block_until_ready(downsample(x, w, b))

    # Reference conv for correctness check.
    ref = jax.lax.conv_general_dilated(
        x, w, window_strides=(2, 1), padding=((1, 1), (0, 0)),
        dimension_numbers=("NCHW", "OIHW", "NCHW"),
    ) + b.reshape(1, C_OUT, 1, 1)

    np.testing.assert_allclose(np.asarray(out), np.asarray(ref), rtol=1e-5, atol=1e-5)
    print("KERNEL_OK")
</pallas_src>

<mosaic_0001>
module attributes {stable_mosaic.version = 11 : i64} {
  func.func @conv_kernel(%arg0: i32, %arg1: memref<27xf32, #tpu.memory_space<smem>>, %arg2: memref<3xf32, #tpu.memory_space<smem>>, %arg3: memref<1x3x8x50xf32, #tpu.memory_space<vmem>>, %arg4: memref<1x3x8x25xf32, #tpu.memory_space<vmem>>) attributes {dimension_semantics = [#tpu.dimension_semantics<parallel>], iteration_bounds = array<i64: 2>, scalar_prefetch = 2 : i64, scratch_operands = 0 : i64, tpu.core_type = #tpu.core_type<tc>, window_params = [{transform_indices = @transform_0, window_bounds = array<i64: 1, 3, 8, 50>}, {transform_indices = @transform_1, window_bounds = array<i64: 1, 3, 8, 25>}]} {
    %c0 = arith.constant 0 : index
    %0 = memref.load %arg1[%c0] : memref<27xf32, #tpu.memory_space<smem>>
    %c1 = arith.constant 1 : index
    %1 = memref.load %arg1[%c1] : memref<27xf32, #tpu.memory_space<smem>>
    %c2 = arith.constant 2 : index
    %2 = memref.load %arg1[%c2] : memref<27xf32, #tpu.memory_space<smem>>
    %c3 = arith.constant 3 : index
    %3 = memref.load %arg1[%c3] : memref<27xf32, #tpu.memory_space<smem>>
    %c4 = arith.constant 4 : index
    %4 = memref.load %arg1[%c4] : memref<27xf32, #tpu.memory_space<smem>>
    %c5 = arith.constant 5 : index
    %5 = memref.load %arg1[%c5] : memref<27xf32, #tpu.memory_space<smem>>
    %c6 = arith.constant 6 : index
    %6 = memref.load %arg1[%c6] : memref<27xf32, #tpu.memory_space<smem>>
    %c7 = arith.constant 7 : index
    %7 = memref.load %arg1[%c7] : memref<27xf32, #tpu.memory_space<smem>>
    %c8 = arith.constant 8 : index
    %8 = memref.load %arg1[%c8] : memref<27xf32, #tpu.memory_space<smem>>
    %c9 = arith.constant 9 : index
    %9 = memref.load %arg1[%c9] : memref<27xf32, #tpu.memory_space<smem>>
    %c10 = arith.constant 10 : index
    %10 = memref.load %arg1[%c10] : memref<27xf32, #tpu.memory_space<smem>>
    %c11 = arith.constant 11 : index
    %11 = memref.load %arg1[%c11] : memref<27xf32, #tpu.memory_space<smem>>
    %c12 = arith.constant 12 : index
    %12 = memref.load %arg1[%c12] : memref<27xf32, #tpu.memory_space<smem>>
    %c13 = arith.constant 13 : index
    %13 = memref.load %arg1[%c13] : memref<27xf32, #tpu.memory_space<smem>>
    %c14 = arith.constant 14 : index
    %14 = memref.load %arg1[%c14] : memref<27xf32, #tpu.memory_space<smem>>
    %c15 = arith.constant 15 : index
    %15 = memref.load %arg1[%c15] : memref<27xf32, #tpu.memory_space<smem>>
    %c16 = arith.constant 16 : index
    %16 = memref.load %arg1[%c16] : memref<27xf32, #tpu.memory_space<smem>>
    %c17 = arith.constant 17 : index
    %17 = memref.load %arg1[%c17] : memref<27xf32, #tpu.memory_space<smem>>
    %c18 = arith.constant 18 : index
    %18 = memref.load %arg1[%c18] : memref<27xf32, #tpu.memory_space<smem>>
    %c19 = arith.constant 19 : index
    %19 = memref.load %arg1[%c19] : memref<27xf32, #tpu.memory_space<smem>>
    %c20 = arith.constant 20 : index
    %20 = memref.load %arg1[%c20] : memref<27xf32, #tpu.memory_space<smem>>
    %c21 = arith.constant 21 : index
    %21 = memref.load %arg1[%c21] : memref<27xf32, #tpu.memory_space<smem>>
    %c22 = arith.constant 22 : index
    %22 = memref.load %arg1[%c22] : memref<27xf32, #tpu.memory_space<smem>>
    %c23 = arith.constant 23 : index
    %23 = memref.load %arg1[%c23] : memref<27xf32, #tpu.memory_space<smem>>
    %c24 = arith.constant 24 : index
    %24 = memref.load %arg1[%c24] : memref<27xf32, #tpu.memory_space<smem>>
    %c25 = arith.constant 25 : index
    %25 = memref.load %arg1[%c25] : memref<27xf32, #tpu.memory_space<smem>>
    %c26 = arith.constant 26 : index
    %26 = memref.load %arg1[%c26] : memref<27xf32, #tpu.memory_space<smem>>
    %c0_0 = arith.constant 0 : index
    %27 = memref.load %arg2[%c0_0] : memref<3xf32, #tpu.memory_space<smem>>
    %c1_1 = arith.constant 1 : index
    %28 = memref.load %arg2[%c1_1] : memref<3xf32, #tpu.memory_space<smem>>
    %c2_2 = arith.constant 2 : index
    %29 = memref.load %arg2[%c2_2] : memref<3xf32, #tpu.memory_space<smem>>
    %30 = tpu.iota {dimensions = array<i32: 0>} : vector<8x25xi32>
    %c0_i32 = arith.constant 0 : i32
    %31 = vector.broadcast %c0_i32 : i32 to vector<8x25xi32>
    %32 = arith.cmpi sgt, %30, %31 : vector<8x25xi32>
    %c0_i32_3 = arith.constant 0 : i32
    %33 = arith.index_cast %c0_i32_3 : i32 to index
    %c0_4 = arith.constant 0 : index
    %c0_5 = arith.constant 0 : index
    %c0_6 = arith.constant 0 : index
    %34 = vector.load %arg3[%33, %c0_4, %c0_5, %c0_6] : memref<1x3x8x50xf32, #tpu.memory_space<vmem>>, vector<1x1x8x50xf32>
    %35 = vector.shape_cast %34 : vector<1x1x8x50xf32> to vector<8x50xf32>
    %36 = vector.extract_strided_slice %35 {offsets = [0, 0], sizes = [8, 25], strides = [1, 1]} : vector<8x50xf32> to vector<8x25xf32>
    %37 = vector.extract_strided_slice %35 {offsets = [0, 25], sizes = [8, 25], strides = [1, 1]} : vector<8x50xf32> to vector<8x25xf32>
    %c1_i32 = arith.constant 1 : i32
    %38 = tpu.dynamic_rotate %37 by %c1_i32 dim 0 : vector<8x25xf32>, i32 -> vector<8x25xf32>
    %cst = arith.constant 0.000000e+00 : f32
    %39 = vector.broadcast %cst : f32 to vector<8x25xf32>
    %40 = arith.select %32, %38, %39 : vector<8x25xi1>, vector<8x25xf32>
    %41 = vector.broadcast %0 : f32 to vector<8x25xf32>
    %42 = arith.mulf %41, %40 : vector<8x25xf32>
    %43 = vector.broadcast %1 : f32 to vector<8x25xf32>
    %44 = arith.mulf %43, %36 : vector<8x25xf32>
    %45 = arith.addf %42, %44 : vector<8x25xf32>
    %46 = vector.broadcast %2 : f32 to vector<8x25xf32>
    %47 = arith.mulf %46, %37 : vector<8x25xf32>
    %48 = arith.addf %45, %47 : vector<8x25xf32>
    %49 = vector.broadcast %9 : f32 to vector<8x25xf32>
    %50 = arith.mulf %49, %40 : vector<8x25xf32>
    %51 = vector.broadcast %10 : f32 to vector<8x25xf32>
    %52 = arith.mulf %51, %36 : vector<8x25xf32>
    %53 = arith.addf %50, %52 : vector<8x25xf32>
    %54 = vector.broadcast %11 : f32 to vector<8x25xf32>
    %55 = arith.mulf %54, %37 : vector<8x25xf32>
    %56 = arith.addf %53, %55 : vector<8x25xf32>
    %57 = vector.broadcast %18 : f32 to vector<8x25xf32>
    %58 = arith.mulf %57, %40 : vector<8x25xf32>
    %59 = vector.broadcast %19 : f32 to vector<8x25xf32>
    %60 = arith.mulf %59, %36 : vector<8x25xf32>
    %61 = arith.addf %58, %60 : vector<8x25xf32>
    %62 = vector.broadcast %20 : f32 to vector<8x25xf32>
    %63 = arith.mulf %62, %37 : vector<8x25xf32>
    %64 = arith.addf %61, %63 : vector<8x25xf32>
    %65 = arith.index_cast %c0_i32_3 : i32 to index
    %c1_7 = arith.constant 1 : index
    %c0_8 = arith.constant 0 : index
    %c0_9 = arith.constant 0 : index
    %66 = vector.load %arg3[%65, %c1_7, %c0_8, %c0_9] : memref<1x3x8x50xf32, #tpu.memory_space<vmem>>, vector<1x1x8x50xf32>
    %67 = vector.shape_cast %66 : vector<1x1x8x50xf32> to vector<8x50xf32>
    %68 = vector.extract_strided_slice %67 {offsets = [0, 0], sizes = [8, 25], strides = [1, 1]} : vector<8x50xf32> to vector<8x25xf32>
    %69 = vector.extract_strided_slice %67 {offsets = [0, 25], sizes = [8, 25], strides = [1, 1]} : vector<8x50xf32> to vector<8x25xf32>
    %c1_i32_10 = arith.constant 1 : i32
    %70 = tpu.dynamic_rotate %69 by %c1_i32_10 dim 0 : vector<8x25xf32>, i32 -> vector<8x25xf32>
    %cst_11 = arith.constant 0.000000e+00 : f32
    %71 = vector.broadcast %cst_11 : f32 to vector<8x25xf32>
    %72 = arith.select %32, %70, %71 : vector<8x25xi1>, vector<8x25xf32>
    %73 = vector.broadcast %3 : f32 to vector<8x25xf32>
    %74 = arith.mulf %73, %72 : vector<8x25xf32>
    %75 = vector.broadcast %4 : f32 to vector<8x25xf32>
    %76 = arith.mulf %75, %68 : vector<8x25xf32>
    %77 = arith.addf %74, %76 : vector<8x25xf32>
    %78 = vector.broadcast %5 : f32 to vector<8x25xf32>
    %79 = arith.mulf %78, %69 : vector<8x25xf32>
    %80 = arith.addf %77, %79 : vector<8x25xf32>
    %81 = arith.addf %48, %80 : vector<8x25xf32>
    %82 = vector.broadcast %12 : f32 to vector<8x25xf32>
    %83 = arith.mulf %82, %72 : vector<8x25xf32>
    %84 = vector.broadcast %13 : f32 to vector<8x25xf32>
    %85 = arith.mulf %84, %68 : vector<8x25xf32>
    %86 = arith.addf %83, %85 : vector<8x25xf32>
    %87 = vector.broadcast %14 : f32 to vector<8x25xf32>
    %88 = arith.mulf %87, %69 : vector<8x25xf32>
    %89 = arith.addf %86, %88 : vector<8x25xf32>
    %90 = arith.addf %56, %89 : vector<8x25xf32>
    %91 = vector.broadcast %21 : f32 to vector<8x25xf32>
    %92 = arith.mulf %91, %72 : vector<8x25xf32>
    %93 = vector.broadcast %22 : f32 to vector<8x25xf32>
    %94 = arith.mulf %93, %68 : vector<8x25xf32>
    %95 = arith.addf %92, %94 : vector<8x25xf32>
    %96 = vector.broadcast %23 : f32 to vector<8x25xf32>
    %97 = arith.mulf %96, %69 : vector<8x25xf32>
    %98 = arith.addf %95, %97 : vector<8x25xf32>
    %99 = arith.addf %64, %98 : vector<8x25xf32>
    %100 = arith.index_cast %c0_i32_3 : i32 to index
    %c2_12 = arith.constant 2 : index
    %c0_13 = arith.constant 0 : index
    %c0_14 = arith.constant 0 : index
    %101 = vector.load %arg3[%100, %c2_12, %c0_13, %c0_14] : memref<1x3x8x50xf32, #tpu.memory_space<vmem>>, vector<1x1x8x50xf32>
    %102 = vector.shape_cast %101 : vector<1x1x8x50xf32> to vector<8x50xf32>
    %103 = vector.extract_strided_slice %102 {offsets = [0, 0], sizes = [8, 25], strides = [1, 1]} : vector<8x50xf32> to vector<8x25xf32>
    %104 = vector.extract_strided_slice %102 {offsets = [0, 25], sizes = [8, 25], strides = [1, 1]} : vector<8x50xf32> to vector<8x25xf32>
    %c1_i32_15 = arith.constant 1 : i32
    %105 = tpu.dynamic_rotate %104 by %c1_i32_15 dim 0 : vector<8x25xf32>, i32 -> vector<8x25xf32>
    %cst_16 = arith.constant 0.000000e+00 : f32
    %106 = vector.broadcast %cst_16 : f32 to vector<8x25xf32>
    %107 = arith.select %32, %105, %106 : vector<8x25xi1>, vector<8x25xf32>
    %108 = vector.broadcast %6 : f32 to vector<8x25xf32>
    %109 = arith.mulf %108, %107 : vector<8x25xf32>
    %110 = vector.broadcast %7 : f32 to vector<8x25xf32>
    %111 = arith.mulf %110, %103 : vector<8x25xf32>
    %112 = arith.addf %109, %111 : vector<8x25xf32>
    %113 = vector.broadcast %8 : f32 to vector<8x25xf32>
    %114 = arith.mulf %113, %104 : vector<8x25xf32>
    %115 = arith.addf %112, %114 : vector<8x25xf32>
    %116 = arith.addf %81, %115 : vector<8x25xf32>
    %117 = vector.broadcast %15 : f32 to vector<8x25xf32>
    %118 = arith.mulf %117, %107 : vector<8x25xf32>
    %119 = vector.broadcast %16 : f32 to vector<8x25xf32>
    %120 = arith.mulf %119, %103 : vector<8x25xf32>
    %121 = arith.addf %118, %120 : vector<8x25xf32>
    %122 = vector.broadcast %17 : f32 to vector<8x25xf32>
    %123 = arith.mulf %122, %104 : vector<8x25xf32>
    %124 = arith.addf %121, %123 : vector<8x25xf32>
    %125 = arith.addf %90, %124 : vector<8x25xf32>
    %126 = vector.broadcast %24 : f32 to vector<8x25xf32>
    %127 = arith.mulf %126, %107 : vector<8x25xf32>
    %128 = vector.broadcast %25 : f32 to vector<8x25xf32>
    %129 = arith.mulf %128, %103 : vector<8x25xf32>
    %130 = arith.addf %127, %129 : vector<8x25xf32>
    %131 = vector.broadcast %26 : f32 to vector<8x25xf32>
    %132 = arith.mulf %131, %104 : vector<8x25xf32>
    %133 = arith.addf %130, %132 : vector<8x25xf32>
    %134 = arith.addf %99, %133 : vector<8x25xf32>
    %135 = vector.broadcast %27 : f32 to vector<8x25xf32>
    %136 = arith.addf %116, %135 : vector<8x25xf32>
    %137 = arith.index_cast %c0_i32_3 : i32 to index
    %c0_17 = arith.constant 0 : index
    %c0_18 = arith.constant 0 : index
    %c0_19 = arith.constant 0 : index
    %138 = vector.load %arg4[%137, %c0_17, %c0_18, %c0_19] : memref<1x3x8x25xf32, #tpu.memory_space<vmem>>, vector<1x1x8x25xf32>
    %139 = vector.shape_cast %138 : vector<1x1x8x25xf32> to vector<8x25xf32>
    %140 = vector.shape_cast %136 : vector<8x25xf32> to vector<1x1x8x25xf32>
    tpu.vector_store %arg4[%137, %c0_17, %c0_18, %c0_19], %140 {strides = array<i32>} : memref<1x3x8x25xf32, #tpu.memory_space<vmem>>, vector<1x1x8x25xf32>,
    %141 = vector.broadcast %28 : f32 to vector<8x25xf32>
    %142 = arith.addf %125, %141 : vector<8x25xf32>
    %143 = arith.index_cast %c0_i32_3 : i32 to index
    %c1_20 = arith.constant 1 : index
    %c0_21 = arith.constant 0 : index
    %c0_22 = arith.constant 0 : index
    %144 = vector.load %arg4[%143, %c1_20, %c0_21, %c0_22] : memref<1x3x8x25xf32, #tpu.memory_space<vmem>>, vector<1x1x8x25xf32>
    %145 = vector.shape_cast %144 : vector<1x1x8x25xf32> to vector<8x25xf32>
    %146 = vector.shape_cast %142 : vector<8x25xf32> to vector<1x1x8x25xf32>
    tpu.vector_store %arg4[%143, %c1_20, %c0_21, %c0_22], %146 {strides = array<i32>} : memref<1x3x8x25xf32, #tpu.memory_space<vmem>>, vector<1x1x8x25xf32>,
    %147 = vector.broadcast %29 : f32 to vector<8x25xf32>
    %148 = arith.addf %134, %147 : vector<8x25xf32>
    %149 = arith.index_cast %c0_i32_3 : i32 to index
    %c2_23 = arith.constant 2 : index
    %c0_24 = arith.constant 0 : index
    %c0_25 = arith.constant 0 : index
    %150 = vector.load %arg4[%149, %c2_23, %c0_24, %c0_25] : memref<1x3x8x25xf32, #tpu.memory_space<vmem>>, vector<1x1x8x25xf32>
    %151 = vector.shape_cast %150 : vector<1x1x8x25xf32> to vector<8x25xf32>
    %152 = vector.shape_cast %148 : vector<8x25xf32> to vector<1x1x8x25xf32>
    tpu.vector_store %arg4[%149, %c2_23, %c0_24, %c0_25], %152 {strides = array<i32>} : memref<1x3x8x25xf32, #tpu.memory_space<vmem>>, vector<1x1x8x25xf32>,
    %c1_i32_26 = arith.constant 1 : i32
    return
  }
  func.func @transform_0(%arg0: i32, %arg1: memref<27xf32, #tpu.memory_space<smem>>, %arg2: memref<3xf32, #tpu.memory_space<smem>>) -> (i32, i32, i32, i32) {
    %c0_i32 = arith.constant 0 : i32
    %c0_i32_0 = arith.constant 0 : i32
    %c0_i32_1 = arith.constant 0 : i32
    %c0_i32_2 = arith.constant 0 : i32
    return %arg0, %c0_i32, %c0_i32_0, %c0_i32_1 : i32, i32, i32, i32
  }
  func.func @transform_1(%arg0: i32, %arg1: memref<27xf32, #tpu.memory_space<smem>>, %arg2: memref<3xf32, #tpu.memory_space<smem>>) -> (i32, i32, i32, i32) {
    %c0_i32 = arith.constant 0 : i32
    %c0_i32_0 = arith.constant 0 : i32
    %c0_i32_1 = arith.constant 0 : i32
    %c0_i32_2 = arith.constant 0 : i32
    return %arg0, %c0_i32, %c0_i32_0, %c0_i32_1 : i32, i32, i32, i32
  }
}

</mosaic_0001>

<bundles_post_ra>
// kernel: squeeze.1
= control target key start
LH: loop header
LB: loop body
LE: loop exit
PB: predicated region body
PF: predicated region fallthrough
CT: control target
= control target key end

     0   :  { %vm16_vm0 = vcmask 23552   ;;  %s84_s12 = smov 18   ;;  %s85_s13 = smov 21   ;;  %vm22_vm1 = vcmask 220352   ;;  %vm28_vm2 = vcmask 195752   ;;  %vm34_vm3 = vcmask 171152   ;;  %s113_s0 = inlined_call_operand.vmem [shape: f32[3,3,3], index: 0, kind: input, shape index: {}]   ;;  %s114_s1 = inlined_call_operand.vmem [shape: f32[27], index: 1, kind: output, shape index: {}]  }
   0x1   :  { %v73_v0 = vld [vmem:[%s113_s0 + $0x8] sm:$0xf]  ;;  %v74_v1 = vld [vmem:[%s113_s0 + $0x4] sm:$0xf]  ;;  %v13_v2 = vld [vmem:[%s113_s0] sm:$0xf] }
   0x2   :  { %8 = vst [vmem:[#allocation1 + $0x10] sm:$0xf] %v73_v0  ;;  %12 = vst [vmem:[#allocation1 + $0x8] sm:$0xf] %v74_v1  ;;  %s83_s0 = smov 24   ;;  %s86_s14 = smov 15  }
   0x3   :  { %14 = vst [vmem:[#allocation1] sm:$0xf] %v13_v2  ;;  %s87_s15 = smov 12   ;;  %s88_s16 = smov 9   ;;  %vm40_vm4 = vcmask 146552   ;;  %vm46_vm5 = vcmask 121952  }
   0x4   :  { %s89_s17 = smov 6   ;;  %s90_s18 = smov 3   ;;  %vm52_vm6 = vcmask 97352   ;;  %vm58_vm7 = vcmask 72752   ;;  %vm64_vm8 = vcmask 48152  }
   0x9   :  { %v19_v3 = vld [vmem:[#allocation1 + $0x12] sm:$0x1]   ;;  %v31_v4 = vld [vmem:[#allocation1 + $0x10] sm:$0x1]   ;;  %v25_v5 = vld [vmem:[#allocation1 + $0x11] sm:$0x1]  }
   0xa   :  { %20 = vrot.lane.b32.xlu0 %v19_v3, %s83_s0  ;;  %32 = vrot.lane.b32.xlu1 %v31_v4, %s84_s12  ;;  %v37_v6 = vld [vmem:[#allocation1 + $0xa] sm:$0x1]   ;;  %v15_v7 = vld [vmem:[#allocation1] sm:$0x1]   ;;  %v43_v8 = vld [vmem:[#allocation1 + $0x9] sm:$0x1]  }
   0xb   :  { %17 = vst.msk [vmem:[#allocation0] sm:$0x1] %vm16_vm0, %v15_v7   ;;  %v49_v9 = vld [vmem:[#allocation1 + $0x8] sm:$0x1]   ;;  %v55_v10 = vld [vmem:[#allocation1 + $0x2] sm:$0x1]  }
   0xc   :  { %v61_v11 = vld [vmem:[#allocation1 + $0x1] sm:$0x1]  }
   0xe   :  { %26 = vrot.lane.b32.xlu0 %v25_v5, %s85_s13  ;;  %38 = vrot.lane.b32.xlu1 %v37_v6, %s86_s14 }
  0x12   :  { %44 = vrot.lane.b32.xlu0 %v43_v8, %s87_s15  ;;  %50 = vrot.lane.b32.xlu1 %v49_v9, %s88_s16 }
  0x16   :  { %56 = vrot.lane.b32.xlu0 %v55_v10, %s89_s17  ;;  %62 = vrot.lane.b32.xlu1 %v61_v11, %s90_s18 }
  0x7c   :  { %v21_v12 = vpop.permute.xlu0 %20   ;;  %v33_v13 = vpop.permute.xlu1 %32  }
  0x7d   :  { %23 = vst.msk [vmem:[#allocation0] sm:$0x1] %vm22_vm1, %v21_v12  }
  0x80   :  { %v27_v14 = vpop.permute.xlu0 %26   ;;  %v39_v15 = vpop.permute.xlu1 %38  }
  0x81   :  { %29 = vst.msk [vmem:[#allocation0] sm:$0x1] %vm28_vm2, %v27_v14  }
  0x82   :  { %35 = vst.msk [vmem:[#allocation0] sm:$0x1] %vm34_vm3, %v33_v13  }
  0x83   :  { %41 = vst.msk [vmem:[#allocation0] sm:$0x1] %vm40_vm4, %v39_v15  }
  0x84   :  { %v45_v16 = vpop.permute.xlu0 %44   ;;  %v51_v17 = vpop.permute.xlu1 %50  }
  0x85   :  { %47 = vst.msk [vmem:[#allocation0] sm:$0x1] %vm46_vm5, %v45_v16  }
  0x86   :  { %53 = vst.msk [vmem:[#allocation0] sm:$0x1] %vm52_vm6, %v51_v17  }
  0x88   :  { %v57_v18 = vpop.permute.xlu0 %56   ;;  %v63_v19 = vpop.permute.xlu1 %62  }
  0x89   :  { %59 = vst.msk [vmem:[#allocation0] sm:$0x1] %vm58_vm7, %v57_v18  }
  0x8a   :  { %65 = vst.msk [vmem:[#allocation0] sm:$0x1] %vm64_vm8, %v63_v19  }
  0x91   :  { %v69_v20 = vld [vmem:[#allocation0] sm:$0x1] }
  0x92   :  { %71 = vst [vmem:[%s114_s1] sm:$0x1] %v69_v20 }

// kernel: downsample.1
= control target key start
LH: loop header
LB: loop body
LE: loop exit
PB: predicated region body
PF: predicated region fallthrough
CT: control target
= control target key end

     0   :  { %s803_s0 = inlined_call_operand.vmem [shape: f32[27], index: 0, kind: input, shape index: {}]   ;;  %s804_s2 = inlined_call_operand.vmem [shape: f32[2,3,8,50], index: 2, kind: input, shape index: {}]   ;;  %s805_s3 = inlined_call_operand.hbm [shape: f32[2,3,8,25], index: 3, kind: output, shape index: {}]   ;;  %s806_s1 = inlined_call_operand.vmem [shape: f32[3], index: 1, kind: input, shape index: {}]  }
   0x1   :  { %s8_s14 = sshll.u32 %s803_s0, 4  ;;  %s12_s17 = sshll.u32 %s806_s1, 4  ;;  %s9_s14 = int_to_ptr.vmem [resolvable:$true] %s8_s14  ;;  %s13_s17 = int_to_ptr.vmem [resolvable:$true] %s12_s17 }
   0x2   :  { %s472_s18 = scalar_lea.vmem %s9_s14, 16  ;;  %p477_p1 = scmp.lt.s32.totalorder %s9_s14, %s9_s14 }
   0x3   :  { %p473_p0 = scmp.ne.s32.totalorder %s9_s14, %s472_s18  ;;  %p478_p2 = scmp.lt.s32.totalorder %s472_s18, %s472_s18 }
   0x5   :  { %p479_p3 = por %p478_p2, %p477_p1 }
   0x7   :  { %p480_p4 = pnand %p479_p3, %p473_p0 }
   0x9   :  { %483 = shalt.err (!%p480_p4)  }
   0xa   :  { %s562_s19 = smov [#allocation3]   ;;  %s484_s20 = scalar_lea.vmem %s13_s17, 16 }
   0xb   :  { %11 = dma.vmem_to_smem %s9_s14, 16, %s562_s19, [#allocation2] }
   0xc   :  { %p485_p5 = scmp.ne.s32.totalorder %s13_s17, %s484_s20  ;;  %p489_p6 = scmp.lt.s32.totalorder %s13_s17, %s13_s17 }
   0xd   :  { %p490_p7 = scmp.lt.s32.totalorder %s484_s20, %s484_s20 }
   0xf   :  { %p491_p8 = por %p490_p7, %p489_p6 }
  0x11   :  { %p492_p9 = pnand %p491_p8, %p485_p5 }
  0x13   :  { %495 = shalt.err (!%p492_p9)  }
  0x14   :  { %s563_s0 = smov [#allocation4]  }
  0x15   :  { %15 = dma.vmem_to_smem %s13_s17, 16, %s563_s0, [#allocation2] }
  0x16   :  { %540 = dma.done.wait [#allocation2], 32 }
  0x17   :  { %541 = vsyncadd [#allocation2], 4294967264 }
  0x18   :  { %17 = sfence }
  0x19   :  { %18 = vsyncpa [#allocation6], 0 }
  0x1a   :  { %20 = vsyncpa [#allocation6 + $0x1], 0  ;;  %s594_s1 = smov 0   ;;  %s596_s21 = smov 0  }
  0x1b   :  { %s598_s22 = smov 0   ;;  %s600_s23 = smov 0  }
  0x1c LB: > { %s615_s24 = sadd.s32 4294967295, %s560_s23   ;;  %s385_s25 = sadd.s32 4294967294, %s560_s23   ;;  %s560_s23 = sphi %s600_s23, %s812_s23   ;;  %s556_s22 = sphi %s598_s22, %s811_s22   ;;  %s552_s21 = sphi %s596_s21, %s810_s21   ;;  %s548_s1 = sphi %s594_s1, %s809_s1  }
  0x1d   : > { %s619_s26 = sadd.s32 1, %s560_s23   ;;  %s59_s27 = sadd.s32 1, %s556_s22 }
  0x1e   : > { %s56_s28 = ssub.s32 %s560_s23, %s619_s26  ;;  %p69_p10 = scmp.ne.s32.totalorder %s556_s22, %s552_s21 }
  0x1f   : > { %p57_p11 = scmp.eq.s32.totalorder %s56_s28, 0  ;;  %p70_p12 = scmp.eq.s32.totalorder %s615_s24, 1 }
  0x20   : > { %p75_p13 = scmp.ne.s32.totalorder %s552_s21, %s548_s1  ;;  %p76_p0 = scmp.eq.s32.totalorder %s385_s25, 1 }
  0x21   : > { %s630_s29 = scalar_select %p57_p11, %s556_s22, %s59_s27  }
  0x22   : > { %p632_p1 = por %p70_p12, %p69_p10  ;;  %p636_p2 = por %p76_p0, %p75_p13 }
  0x23   : > { %p388_p3 = scmp.ge.s32.totalorder %s560_s23, 1  ;;  %p102_p4 = scmp.lt.s32.totalorder %s560_s23, 3 }
  0x25   : > { %p103_p5 = pnand %p388_p3, %p102_p4 }
  0x26   : > { %p122_p6 = scmp.lt.s32.totalorder (!%p103_p5), %s615_s24, 1  ;;  %s391_s5 = sld [smem:[#allocation3 + $0x2]] (!%p103_p5)  ;;  %v157_v21 = vlaneseq (!%p103_p5)  ;;  %vm299_vm1 = vcmask (!%p103_p5), 203776  }
  0x27   : > { %106 = sbr.rel (%p103_p5) target bundleno = 208 (0xd0), region = 24  ;;  %s400_s6 = sld [smem:[#allocation3 + $0xb]] (!%p103_p5) }
  0x28   : > { %s409_s8 = sld [smem:[#allocation3 + $0x14]] (!%p103_p5)  ;;  %s394_s10 = sld [smem:[#allocation3 + $0x5]] (!%p103_p5)  ;;  %v158_v22 = vshrl.u32 (!%p103_p5), %v157_v21, 7 }
  0x29   : > { %s403_s11 = sld [smem:[#allocation3 + $0xe]] (!%p103_p5)  ;;  %s564_s15 = smov (!%p103_p5), 103  }
  0x2a   : > { %s412_s16 = sld [smem:[#allocation3 + $0x17]] (!%p103_p5)  ;;  %s397_s17 = sld [smem:[#allocation3 + $0x8]] (!%p103_p5)  ;;  %vm159_vm0 = vcmp.gt.s32.totalorder (!%p103_p5), %v158_v22, 0 }
  0x2b   : > { %s406_s18 = sld [smem:[#allocation3 + $0x11]] (!%p103_p5)  ;;  %s415_s19 = sld [smem:[#allocation3 + $0x1a]] (!%p103_p5) }
  0x2c   : > { %v172_v2 = vstv (!%p103_p5), %s391_s5  ;;  %s390_s20 = sld [smem:[#allocation3 + $0x1]] (!%p103_p5)  ;;  %s399_s0 = sld [smem:[#allocation3 + $0xa]] (!%p103_p5) }
  0x2d   : > { %v184_v5 = vstv (!%p103_p5), %s400_s6  ;;  %s677_s25 = sld [smem:[#allocation3]] (!%p103_p5)  ;;  %s679_s27 = sld [smem:[#allocation3 + $0x9]] (!%p103_p5) }
  0x2e   : > { %s123_s7 = scalar_select %p122_p6, %s615_s24, 1  ;;  %v196_v6 = vstv %s409_s8  ;;  %v216_v9 = vstv %s394_s10 }
  0x2f   : > { %v229_v10 = vstv %s403_s11  ;;  %s681_s28 = sld [smem:[#allocation3 + $0x12]]  ;;  %s683_s5 = sld [smem:[#allocation3 + $0x4]] }
  0x30   : > { %s426_s9 = smul.u32 24, %s123_s7  ;;  %v242_v13 = vstv %s412_s16  ;;  %v263_v14 = vstv %s397_s17  ;;  %s685_s6 = sld [smem:[#allocation3 + $0xd]] }
  0x31   : > { %v276_v17 = vstv %s406_s18  ;;  %v289_v18 = vstv %s415_s19  ;;  %s687_s7 = sld [smem:[#allocation3 + $0x13]]  ;;  %s693_s10 = sld [smem:[#allocation3 + $0x16]] }
  0x32   : > { %s126_s14 = scalar_lea.vmem %s804_s2, %s426_s9  ;;  %s689_s8 = sld [smem:[#allocation3 + $0x3]]  ;;  %v169_v23 = vstv %s390_s20  ;;  %v181_v26 = vstv %s399_s0 }
  0x33   : > { %v647_v0 = vld [vmem:[%s126_s14 + $0x10] sm:$0xff]  ;;  %v649_v1 = vld [vmem:[%s126_s14] sm:$0xff]  ;;  %v656_v4 = vld [vmem:[%s126_s14 + $0x8] sm:$0xff]  ;;  %s691_s9 = sld [smem:[#allocation3 + $0xc]]  ;;  %s695_s11 = sld [smem:[#allocation3 + $0x7]]  ;;  %v167_v28 = vstv %s677_s25 }
  0x34   : > { %253 = vrot.lane.b32.xlu1 %v647_v0, %s564_s15  ;;  %162 = vrot.lane.b32.xlu0 %v649_v1, %s564_s15  ;;  %v173_v3 = vmul.f32 %v172_v2, %v649_v1  ;;  %v185_v7 = vmul.f32 %v184_v5, %v649_v1  ;;  %v197_v8 = vmul.f32 %v196_v6, %v649_v1  ;;  %s697_s12 = sld [smem:[#allocation3 + $0x15]]  ;;  %s699_s13 = sld [smem:[#allocation3 + $0x6]]  ;;  %v179_v30 = vstv %s679_s27 }
  0x35   : > { %v217_v11 = vmul.f32 %v656_v4, %v216_v9  ;;  %v230_v12 = vmul.f32 %v656_v4, %v229_v10  ;;  %v243_v15 = vmul.f32 %v656_v4, %v242_v13  ;;  %v264_v16 = vmul.f32 %v647_v0, %v263_v14  ;;  %s704_s14 = sld [smem:[#allocation3 + $0xf]]  ;;  %s712_s16 = sld [smem:[#allocation3 + $0x18]] }
  0x36   : > { %v277_v19 = vmul.f32 %v647_v0, %v276_v17  ;;  %v290_v20 = vmul.f32 %v647_v0, %v289_v18  ;;  %v170_v29 = vmul.f32 %v169_v23, %v649_v1  ;;  %v182_v32 = vmul.f32 %v181_v26, %v649_v1  ;;  %s714_s17 = sld [smem:[#allocation3 + $0x19]]  ;;  %s731_s18 = sld [smem:[#allocation4]] }
  0x37   : > { %v213_v33 = vstv %s683_s5  ;;  %v226_v34 = vstv %s685_s6  ;;  %v191_v38 = vstv %s681_s28  ;;  %v193_v39 = vstv %s687_s7  ;;  %s119_s19 = sand.u32 1, %s552_s21   ;;  %s738_s20 = sld [smem:[#allocation4 + $0x1]] }
  0x38   : > { %206 = vrot.lane.b32.xlu0 %v656_v4, %s564_s15  ;;  %175 = vrot.lane.b32.xlu1 %v173_v3, %s564_s15  ;;  %v211_v40 = vstv %s689_s8  ;;  %v214_v45 = vmul.f32 %v656_v4, %v213_v33  ;;  %v227_v46 = vmul.f32 %v656_v4, %v226_v34  ;;  %v239_v47 = vstv %s693_s10  ;;  %s741_s0 = sld [smem:[#allocation4 + $0x2]]  ;;  %s425_s25 = smul.u32 24, %s119_s19 }
  0x39   : > { %v224_v44 = vstv %s691_s9  ;;  %v260_v48 = vstv %s695_s11  ;;  %v194_v50 = vmul.f32 %v193_v39, %v649_v1  ;;  %v240_v61 = vmul.f32 %v656_v4, %v239_v47  ;;  %s427_s27 = smul.u32 384, %s615_s24  ;;  %s762_s24 = scalar_lea.sflag [#allocation6], %s119_s19 }
  0x3a   : > { %v237_v51 = vstv %s697_s12  ;;  %v258_v52 = vstv %s699_s13  ;;  %v261_v62 = vmul.f32 %v647_v0, %v260_v48  ;;  %s121_s28 = scalar_lea.vmem [#allocation5], %s425_s25  ;;  %s565_s10 = smov [#allocation5]  }
  0x3b   : > { %v271_v2 = vstv %s704_s14  ;;  %s323_s5 = sshll.u32 %s121_s28, 4  ;;  %s754_s8 = scalar_lea.hbm %s805_s3, %s427_s27  ;;  %s756_s5 = int_to_ptr.vmem [resolvable:$true] %s323_s5 }
  0x3c   : > { %187 = vrot.lane.b32.xlu0 %v185_v7, %s564_s15  ;;  %199 = vrot.lane.b32.xlu1 %v197_v8, %s564_s15  ;;  %v284_v7 = vstv %s712_s16  ;;  %v286_v8 = vstv %s714_s17  ;;  %s496_s9 = scalar_lea.vmem %s756_s5, 384  ;;  %s500_s11 = sshll.u32 %s565_s10, 4  ;;  %s501_s11 = int_to_ptr.vmem [resolvable:$false] %s500_s11 }
  0x3d   : > { %v287_v18 = vmul.f32 %v647_v0, %v286_v8  ;;  %p497_p7 = scmp.ne.s32.totalorder %s756_s5, %s496_s9  ;;  %s502_s12 = scalar_lea.vmem %s501_s11, 768 }
  0x3e   : > { %p503_p10 = scmp.lt.s32.totalorder %s756_s5, %s501_s11  ;;  %p504_p11 = scmp.lt.s32.totalorder %s502_s12, %s496_s9 }
  0x3f   : > { %p498_p8 = pnand %p497_p7, %p632_p1 }
  0x40   : > { %219 = vrot.lane.b32.xlu0 %v217_v11, %s564_s15  ;;  %232 = vrot.lane.b32.xlu1 %v230_v12, %s564_s15  ;;  %p505_p12 = por %p504_p11, %p503_p10 }
  0x41   : > { %p499_p9 = pneg %p498_p8 }
  0x43   : > { %p506_p13 = pnand %p505_p12, %p499_p9 }
  0x44   : > { %245 = vrot.lane.b32.xlu0 %v243_v15, %s564_s15  ;;  %266 = vrot.lane.b32.xlu1 %v264_v16, %s564_s15 }
  0x48   : > { %279 = vrot.lane.b32.xlu0 %v277_v19, %s564_s15  ;;  %292 = vrot.lane.b32.xlu1 %v290_v20, %s564_s15  ;;  %s706_s15 = sld [smem:[#allocation3 + $0x10]] }
  0x4e   : > { %v273_v3 = vstv %s706_s15 }
  0x4f   : > { %v274_v16 = vmul.f32 %v647_v0, %v273_v3 }
  0xa6   : > { %v254_v24 = vpop.permute.xlu1 %253  ;;  %v163_v25 = vpop.permute.xlu0 %162 }
  0xa7   : > { %v165_v27 = vrot.slane %v163_v25, 7  ;;  %v256_v35 = vrot.slane %v254_v24, 7 }
  0xa9   : > { %v166_v31 = vsel %vm159_vm0, %v165_v27, 0.0  ;;  %v257_v53 = vsel %vm159_vm0, %v256_v35, 0.0 }
  0xaa   : > { %v207_v36 = vpop.permute.xlu0 %206  ;;  %v176_v37 = vpop.permute.xlu1 %175  ;;  %v168_v42 = vmul.f32 %v167_v28, %v166_v31  ;;  %v180_v43 = vmul.f32 %v179_v30, %v166_v31  ;;  %v192_v55 = vmul.f32 %v191_v38, %v166_v31  ;;  %v259_v6 = vmul.f32 %v258_v52, %v257_v53 }
  0xab   : > { %v209_v41 = vrot.slane %v207_v36, 7  ;;  %v272_v15 = vmul.f32 %v271_v2, %v257_v53  ;;  %v285_v17 = vmul.f32 %v284_v7, %v257_v53  ;;  %v297_v28 = vstv %s731_s18 }
  0xac   : > { %v171_v59 = vadd.f32 %v170_v29, %v168_v42  ;;  %v183_v60 = vadd.f32 %v182_v32, %v180_v43  ;;  %v195_v9 = vadd.f32 %v194_v50, %v192_v55  ;;  %v262_v22 = vadd.f32 %v261_v62, %v259_v6 }
  0xad   : > { %v210_v49 = vsel %vm159_vm0, %v209_v41, 0.0  ;;  %v275_v31 = vadd.f32 %v274_v16, %v272_v15  ;;  %v288_v32 = vadd.f32 %v287_v18, %v285_v17  ;;  %v305_v38 = vstv %s741_s0 }
  0xae   : > { %v188_v54 = vpop.permute.xlu0 %187  ;;  %v200_v56 = vpop.permute.xlu1 %199  ;;  %v212_v57 = vmul.f32 %v211_v40, %v210_v49  ;;  %v225_v58 = vmul.f32 %v224_v44, %v210_v49  ;;  %v238_v5 = vmul.f32 %v237_v51, %v210_v49  ;;  %v178_v12 = vadd.f32 %v176_v37, %v171_v59 }
  0xaf   : > { %v190_v13 = vadd.f32 %v188_v54, %v183_v60  ;;  %v202_v25 = vadd.f32 %v200_v56, %v195_v9  ;;  %v301_v37 = vstv %s738_s20 }
  0xb0   : > { %v215_v63 = vadd.f32 %v214_v45, %v212_v57  ;;  %v228_v1 = vadd.f32 %v227_v46, %v225_v58  ;;  %v241_v21 = vadd.f32 %v240_v61, %v238_v5 }
  0xb2   : > { %v220_v10 = vpop.permute.xlu0 %219  ;;  %v233_v11 = vpop.permute.xlu1 %232 }
  0xb3   : > { %v222_v4 = vadd.f32 %v220_v10, %v215_v63  ;;  %v235_v14 = vadd.f32 %v233_v11, %v228_v1 }
  0xb5   : > { %v223_v19 = vadd.f32 %v222_v4, %v178_v12  ;;  %v236_v20 = vadd.f32 %v235_v14, %v190_v13 }
  0xb6   : > { %v246_v23 = vpop.permute.xlu0 %245  ;;  %v267_v24 = vpop.permute.xlu1 %266 }
  0xb7   : > { %v248_v26 = vadd.f32 %v246_v23, %v241_v21  ;;  %v269_v27 = vadd.f32 %v267_v24, %v262_v22 }
  0xb9   : > { %v249_v29 = vadd.f32 %v248_v26, %v202_v25  ;;  %v270_v30 = vadd.f32 %v269_v27, %v223_v19 }
  0xba   : > { %v280_v0 = vpop.permute.xlu0 %279  ;;  %v293_v33 = vpop.permute.xlu1 %292 }
  0xbb   : > { %v298_v34 = vadd.f32 %v297_v28, %v270_v30  ;;  %v282_v35 = vadd.f32 %v280_v0, %v275_v31  ;;  %v295_v36 = vadd.f32 %v293_v33, %v288_v32 }
  0xbd   : > { %300 = vst.msk [vmem:[%s121_s28] sm:$0xff] %vm299_vm1, %v298_v34  ;;  %v283_v39 = vadd.f32 %v282_v35, %v236_v20  ;;  %v296_v40 = vadd.f32 %v295_v36, %v249_v29 }
  0xbf   : > { %v302_v41 = vadd.f32 %v301_v37, %v283_v39  ;;  %v306_v42 = vadd.f32 %v305_v38, %v296_v40 }
  0xc1   : > { %420 = vst.msk [vmem:[%s121_s28 + $0x8] sm:$0xff] %vm299_vm1, %v302_v41  ;;  %421 = vst.msk [vmem:[%s121_s28 + $0x10] sm:$0xff] %vm299_vm1, %v306_v42 }
  0xc2   : > { %509 = shalt.err (!%p506_p13)
}
  0xc3   : > { %s510_s13 = scalar_lea.hbm %s754_s8, 384  ;;  %s514_s16 = scalar_lea.hbm %s805_s3, 768 }
  0xc4   : > { %p511_p0 = scmp.ne.s32.totalorder %s754_s8, %s510_s13  ;;  %p515_p5 = scmp.lt.u32.totalorder %s754_s8, %s805_s3 }
  0xc5   : > { %p516_p6 = scmp.lt.u32.totalorder %s514_s16, %s510_s13  ;;  %p518_p8 = scmp.lt.u32.totalorder %s510_s13, %s754_s8 }
  0xc6   : > { %p512_p3 = pnand %p511_p0, %p632_p1 }
  0xc7   : > { %p517_p7 = por %p516_p6, %p515_p5 }
  0xc8   : > { %p513_p4 = pneg %p512_p3 }
  0xc9   : > { %p519_p9 = por %p518_p8, %p517_p7 }
  0xcb   : > { %p520_p10 = pnand %p519_p9, %p513_p4 }
  0xcd   : > { %523 = shalt.err (!%p520_p10)
}
  0xce   : > { %s566_s19 = smov 128   ;;  %s567_s20 = smov 8  }
  0xcf   : > { %428 = dma.vmem_to_hbm [thread:$0]  (%p632_p1), %s756_s5, 384, %s754_s8, %s762_s24, %s566_s19, %s566_s19, %s567_s20  }
  0xd0 PF: > { %p434_p11 = scmp.ge.s32.totalorder %s560_s23, 2  ;;  %s338_s0 = sand.u32 1, %s548_s1  }
  0xd1   : > { %s339_s25 = scalar_lea.sflag [#allocation6], %s338_s0 }
  0xd2   : > { %p431_p12 = pnand %p434_p11, %p636_p2 }
  0xd4   : > { %543 = dma.done.wait (!%p431_p12), %s339_s25, 384  }
  0xd5   : > { %545 = vsyncadd (!%p431_p12), %s339_s25, 4294966912  ;;  %p23_p13 = scmp.ge.s32.totalorder %s619_s26, 4   ;;  %s809_s1 = smov %s552_s21 }
  0xd6   : > { %s810_s21 = smov %s556_s22  ;;  %s811_s22 = smov %s630_s29 }
  0xd7   : > { %s812_s23 = smov %s619_s26  ;;  %25 = sbr.rel (!%p23_p13) target bundleno = 28 (0x1c), region = 63 }
  0xde   :  { %344 = vsyncpa [#allocation6], 1 }
  0xdf   :  { %346 = vsyncpa [#allocation6 + $0x1], 1 }

</bundles_post_ra>
